<compile_context>
chip_gen: v6e
topology: v6e:2x2x1
jax: 0.10.0
libtpu: 0.0.40
codegen_flags: <defaults>
</compile_context>

<pallas_src>
import jax
import jax.numpy as jnp
from jax.experimental import pallas as pl
from jax.experimental.pallas import tpu as pltpu


def _unflatten_dma_kernel(x_hbm, o_hbm, sem):
    # Single descriptor: whole-array HBM -> HBM copy at DMA roofline.
    cp = pltpu.make_async_copy(x_hbm, o_hbm, sem)
    cp.start()
    cp.wait()


def _identity_copy_pallas(x: jax.Array) -> jax.Array:
    """One-shot HBM->HBM DMA identity copy (fusion anchor only)."""
    return pl.pallas_call(
        _unflatten_dma_kernel,
        out_shape=jax.ShapeDtypeStruct(x.shape, x.dtype),
        in_specs=[pl.BlockSpec(memory_space=pl.ANY)],
        out_specs=pl.BlockSpec(memory_space=pl.ANY),
        scratch_shapes=[pltpu.SemaphoreType.DMA(())],
    )(x)


def unflatten(x: jax.Array, channels: int, *,
              use_pallas_anchor: bool = False) -> jax.Array:
    """Equivalent of UnFlatten(channels).forward(x): view as (B, channels, 1, 1)."""
    b = x.shape[0]
    n = 1
    for d in x.shape:
        n *= int(d)
    assert n == b * channels, (
        f"input has {n} elements, expected B*channels = {b * channels}")

    if not use_pallas_anchor:
        # Fast path: a .view() is pure metadata -- no kernel, no HBM traffic.
        return x.reshape(b, channels, 1, 1)

    # Fusion-anchor path: one HBM->HBM DMA, then a free metadata reshape.
    y = _identity_copy_pallas(x)
    return y.reshape(b, channels, 1, 1)


if __name__ == "__main__":
    key = jax.random.PRNGKey(0)

    # Small VAE-like shape: batch=2, channels=32.
    batch, channels = 2, 32
    x = jax.random.normal(key, (batch, channels), dtype=jnp.float32)
    x_ref = x.reshape(batch, channels, 1, 1)

    # 1) Default fast path (pure reshape -- the recommended implementation).
    y_fast = unflatten(x, channels)
    jax.block_until_ready(y_fast)
    assert y_fast.shape == (batch, channels, 1, 1), y_fast.shape
    assert y_fast.dtype == x.dtype
    assert bool(jnp.all(y_fast == x_ref))

    # 2) Pallas fusion-anchor path (single HBM->HBM DMA), run once.
    y_kernel = unflatten(x, channels, use_pallas_anchor=True)
    jax.block_until_ready(y_kernel)
    assert y_kernel.shape == (batch, channels, 1, 1), y_kernel.shape
    assert y_kernel.dtype == x.dtype
    assert bool(jnp.all(y_kernel == x_ref))

    # 3) bf16 + non-128-multiple inner dim: same guarded DMA path (no (8,128)
    #    tiling constraints, no oversized single-block VMEM fallback).
    b3, c3 = 4, 20
    x3 = jax.random.normal(jax.random.PRNGKey(2), (b3, c3)).astype(jnp.bfloat16)
    y3 = unflatten(x3, c3, use_pallas_anchor=True)
    jax.block_until_ready(y3)
    assert y3.shape == (b3, c3, 1, 1)
    assert y3.dtype == jnp.bfloat16
    assert bool(jnp.all(y3 == x3.reshape(b3, c3, 1, 1)))

    print("KERNEL_OK")
</pallas_src>

<mosaic_0001>
module attributes {stable_mosaic.version = 11 : i64} {
  func.func @_unflatten_dma_kernel(%arg0: memref<2x32xf32, #tpu.memory_space<any>>, %arg1: memref<2x32xf32, #tpu.memory_space<any>>, %arg2: memref<!tpu.dma_semaphore, #tpu.memory_space<semaphore_mem>>) attributes {dimension_semantics = [], scalar_prefetch = 0 : i64, scratch_operands = 1 : i64, tpu.core_type = #tpu.core_type<tc>} {
    tpu.enqueue_dma source(%arg0 : memref<2x32xf32, #tpu.memory_space<any>>) target(%arg1 : memref<2x32xf32, #tpu.memory_space<any>>) target_semaphore(%arg2 : memref<!tpu.dma_semaphore, #tpu.memory_space<semaphore_mem>>)
    tpu.wait_dma2 semaphore(%arg2 : memref<!tpu.dma_semaphore, #tpu.memory_space<semaphore_mem>>) src(%arg0 : memref<2x32xf32, #tpu.memory_space<any>>) dst(%arg1 : memref<2x32xf32, #tpu.memory_space<any>>)
    return
  }
}

</mosaic_0001>

<bundles_post_ra>
// kernel: tpu_custom_call.1
= control target key start
LH: loop header
LB: loop body
LE: loop exit
PB: predicated region body
PF: predicated region fallthrough
CT: control target
= control target key end

     0   :  { %s28_s6 = smov [#allocation2]   ;;  %s29_s7 = smov 131072   ;;  %s47_s0 = inlined_call_operand.hbm [shape: f32[2,32], index: 0, kind: input, shape index: {}]   ;;  %s48_s1 = inlined_call_operand.hbm [shape: f32[2,32], index: 1, kind: output, shape index: {}]  }
   0x1   :  { %s30_s8 = smov 0  }
   0x2   :  { %12 = dma.general %s47_s0, 32, %s48_s1, %s28_s6, %s29_s7, [#allocation4], %s30_s8, 0  }
   0x3   :  { %26 = dma.done.wait [#allocation2], 32 }
   0x4   :  { %27 = vsyncadd [#allocation2], 4294967264 }
   0x5   :  { %16 = vsyncmov [#allocation2] }
   0x8   :  { %s17_s13 = vpop.sfrf %16 }
   0x9   :  { %p22_p0 = scmp.ne.s32.totalorder %s17_s13, 0 }
   0xb   :  { %21 = shalt.err (%p22_p0)  }

</bundles_post_ra>
